<compile_context>
chip_gen: v5e
topology: v5e:2x2
jax: 0.10.0
libtpu: 0.0.40
codegen_flags: <defaults>
</compile_context>

<pallas_src>
import functools

import jax
import jax.numpy as jnp
from jax.experimental import pallas as pl
from jax.experimental.pallas import tpu as pltpu


# ----------------------------------------------------------------------------
# Kernels
# ----------------------------------------------------------------------------
def _encode_kernel(x_ref, w_enc_t_ref, b_enc_ref,
                   pre_ref, l0_ref,
                   acc_ref, l0_acc_ref):
    # grid = (N/tm, L/tn_e, D/tk_e); contraction (D) axis last.
    j = pl.program_id(1)
    kk = pl.program_id(2)

    @pl.when(kk == 0)
    def _():
        acc_ref[...] = jnp.zeros_like(acc_ref)

    # b_dec is folded into b_enc_eff in the wrapper, so the MXU sees x directly.
    acc_ref[...] += jnp.dot(x_ref[...], w_enc_t_ref[...],
                            preferred_element_type=jnp.float32)

    @pl.when(kk == pl.num_programs(2) - 1)
    def _():
        z = acc_ref[...] + b_enc_ref[...]                 # f32 (tm,tn) + (1,tn)
        p = jnp.maximum(z, 0.0)
        pre_ref[...] = p.astype(pre_ref.dtype)            # bf16 HBM writeback
        # fused per-token l0 over this L-tile; carried across j in VMEM scratch.
        cnt = jnp.sum((p > 0.0).astype(jnp.float32), axis=-1, keepdims=True)

        @pl.when(j == 0)
        def _():
            l0_acc_ref[...] = cnt

        @pl.when(j > 0)
        def _():
            l0_acc_ref[...] = l0_acc_ref[...] + cnt

        @pl.when(j == pl.num_programs(1) - 1)
        def _():
            l0_ref[...] = l0_acc_ref[...]


def _decode_kernel(acts_ref, w_dec_ref, b_dec_ref, x_ref, xmean_ref,
                   out_ref, l2_ref, var_ref,
                   acc_ref, l2_acc_ref, var_acc_ref):
    # grid = (N/tm, D/tn_d, L/tk_d); contraction (L) axis last.
    j = pl.program_id(1)
    kk = pl.program_id(2)

    @pl.when(kk == 0)
    def _():
        acc_ref[...] = jnp.zeros_like(acc_ref)

    acc_ref[...] += jnp.dot(acts_ref[...], w_dec_ref[...],
                            preferred_element_type=jnp.float32)

    @pl.when(kk == pl.num_programs(2) - 1)
    def _():
        y = acc_ref[...] + b_dec_ref[...]                 # f32 (tm,tn)
        out_ref[...] = y.astype(out_ref.dtype)
        x = x_ref[...]                                    # original f32 x block
        e = y - x
        l2_blk = jnp.sum(e * e, axis=-1, keepdims=True)   # (tm,1)
        d = x - xmean_ref[...]                            # token-mean hoisted to JAX
        var_blk = jnp.sum(d * d, axis=-1, keepdims=True)  # (tm,1)

        @pl.when(j == 0)
        def _():
            l2_acc_ref[...] = l2_blk
            var_acc_ref[...] = var_blk

        @pl.when(j > 0)
        def _():
            l2_acc_ref[...] = l2_acc_ref[...] + l2_blk
            var_acc_ref[...] = var_acc_ref[...] + var_blk

        @pl.when(j == pl.num_programs(1) - 1)
        def _():
            l2_ref[...] = l2_acc_ref[...]
            var_ref[...] = var_acc_ref[...]


# ----------------------------------------------------------------------------
# Wrapper
# ----------------------------------------------------------------------------
def _pick_tile(dim, pref, base):
    """Largest tile <= pref that divides `dim` and is a multiple of `base`,
    falling back to the full dimension (allowed by the block-shape rules)."""
    if dim <= pref:
        return dim
    t = (pref // base) * base
    while t >= base:
        if dim % t == 0:
            return t
        t -= base
    return dim


@functools.lru_cache(maxsize=1)
def _vmem_limit_bytes():
    # Generation-aware scoped-VMEM cap: ~3/4 of physical, clamped to [48, 96] MiB.
    # (v7x: 64 MiB physical -> 48 MiB; v5e/v6e: 128 MiB -> 96 MiB.)  Our tile
    # footprints stay <= ~31 MiB, so the fallback of 48 MiB is always enough.
    fallback = 48 * 1024 * 1024
    try:
        info = pltpu.get_tpu_info()
        cap = int(getattr(info, "vmem_capacity_bytes", 64 * 1024 * 1024))
    except Exception:
        return fallback
    if cap < 32 * 1024 * 1024:
        return fallback
    return int(min(96 * 1024 * 1024, max(fallback, (cap * 3) // 4)))


@functools.partial(jax.jit, static_argnames=("k",))
def sae_forward(x, w_enc_t, b_enc, w_dec, b_dec, *, k):
    """x: (B, S, D); w_enc_t: (D, L) pre-transposed encoder weight;
    b_enc: (L,); w_dec: (L, D); b_dec: (D,)."""
    B, S, D = x.shape
    N = B * S
    L = w_enc_t.shape[1]

    # bf16 operand streams (no-ops if the caller already pre-cast the weights),
    # f32 biases / accumulators / per-token stats. Stats use the ORIGINAL f32 x.
    x_f = x.reshape(N, D).astype(jnp.float32)
    x_b = x_f.astype(jnp.bfloat16)
    w_enc_t_b = w_enc_t.astype(jnp.bfloat16)
    w_dec_b = w_dec.astype(jnp.bfloat16)
    b_dec_f = b_dec.reshape(1, D).astype(jnp.float32)
    # Fold the input bias into the encoder bias: (x - b_dec) @ W^T + b_enc
    #   == x @ W^T + (b_enc - b_dec @ W^T).  Done once per call, bf16 matmul.
    b_enc_eff = (b_enc.reshape(1, L).astype(jnp.float32)
                 - jnp.dot(b_dec_f.astype(jnp.bfloat16), w_enc_t_b,
                           preferred_element_type=jnp.float32))

    # Large tiles (bandwidth: weight re-streams ~ N/tm, activation re-reads
    # ~ L/tn_e and D/tn_d).  bf16 sublane packing -> tm multiple of 16; MXU
    # lanes -> tn/tk multiples of 128.  Worst-case VMEM footprint ~31 MiB.
    tm = _pick_tile(N, 1024, 16)          # token tile (sublane axis)
    if N // tm < 2 and tm % 32 == 0:
        tm //= 2                          # keep both v7x TensorCores busy
    tn_e = _pick_tile(L, 2048, 128)       # encode output-feature tile (lanes)
    tk_e = _pick_tile(D, 512, 128)        # encode contraction tile
    tn_d = _pick_tile(D, 1024, 128)       # decode output-feature tile (lanes)
    tk_d = _pick_tile(L, 512, 128)        # decode contraction tile

    compiler_params = pltpu.CompilerParams(
        dimension_semantics=("parallel", "arbitrary", "arbitrary"),
        vmem_limit_bytes=_vmem_limit_bytes(),
    )

    # ---- encode + fused per-token l0 (Pallas) ----
    pre_acts, pt_l0 = pl.pallas_call(
        _encode_kernel,
        grid_spec=pltpu.PrefetchScalarGridSpec(
            num_scalar_prefetch=0,
            grid=(N // tm, L // tn_e, D // tk_e),
            in_specs=[
                pl.BlockSpec((tm, tk_e), lambda i, j, kk: (i, kk)),    # x (bf16)
                pl.BlockSpec((tk_e, tn_e), lambda i, j, kk: (kk, j)),  # W_enc^T
                pl.BlockSpec((1, tn_e), lambda i, j, kk: (0, j)),      # b_enc_eff
            ],
            out_specs=[
                pl.BlockSpec((tm, tn_e), lambda i, j, kk: (i, j)),     # pre_acts (bf16)
                pl.BlockSpec((tm, 1), lambda i, j, kk: (i, 0)),        # per-token l0
            ],
            scratch_shapes=[
                pltpu.VMEM((tm, tn_e), jnp.float32),                   # matmul acc
                pltpu.VMEM((tm, 1), jnp.float32),                      # l0 carry
            ],
        ),
        out_shape=(
            jax.ShapeDtypeStruct((N, L), jnp.bfloat16),
            jax.ShapeDtypeStruct((N, 1), jnp.float32),
        ),
        compiler_params=compiler_params,
    )(x_b, w_enc_t_b, b_enc_eff)

    # ---- select_topk: GLOBAL top-(k*N) over flattened latents (JAX glue) ----
    # TODO(synk): replace the sort-based top_k with a two-pass global-threshold
    # selection fused into the encode finalize for very large N*L.
    flat = pre_acts.reshape(-1)                                        # bf16
    total_k = k * N
    top_vals, top_flat_idx = jax.lax.top_k(flat, total_k)
    top_acts_b = (jnp.zeros((N * L,), jnp.bfloat16)
                  .at[top_flat_idx].set(top_vals)
                  .reshape(N, L))
    top_indices = (top_flat_idx % L).reshape(N, k).astype(jnp.int32)

    # Token-mean hoisted out of the kernel (true mean over ALL tokens, f32 x).
    x_mean = jnp.mean(x_f, axis=0, keepdims=True)                      # (1, D)

    # ---- decode + fused per-token l2 / variance (Pallas) ----
    sae_out, pt_l2, pt_var = pl.pallas_call(
        _decode_kernel,
        grid_spec=pltpu.PrefetchScalarGridSpec(
            num_scalar_prefetch=0,
            grid=(N // tm, D // tn_d, L // tk_d),
            in_specs=[
                pl.BlockSpec((tm, tk_d), lambda i, j, kk: (i, kk)),    # top_acts (bf16)
                pl.BlockSpec((tk_d, tn_d), lambda i, j, kk: (kk, j)),  # W_dec (bf16)
                pl.BlockSpec((1, tn_d), lambda i, j, kk: (0, j)),      # b_dec (f32)
                pl.BlockSpec((tm, tn_d), lambda i, j, kk: (i, j)),     # x (f32)
                pl.BlockSpec((1, tn_d), lambda i, j, kk: (0, j)),      # x_mean (f32)
            ],
            out_specs=[
                pl.BlockSpec((tm, tn_d), lambda i, j, kk: (i, j)),     # sae_out (f32)
                pl.BlockSpec((tm, 1), lambda i, j, kk: (i, 0)),        # per-token l2
                pl.BlockSpec((tm, 1), lambda i, j, kk: (i, 0)),        # per-token var
            ],
            scratch_shapes=[
                pltpu.VMEM((tm, tn_d), jnp.float32),                   # matmul acc
                pltpu.VMEM((tm, 1), jnp.float32),                      # l2 carry
                pltpu.VMEM((tm, 1), jnp.float32),                      # var carry
            ],
        ),
        out_shape=(
            jax.ShapeDtypeStruct((N, D), jnp.float32),
            jax.ShapeDtypeStruct((N, 1), jnp.float32),
            jax.ShapeDtypeStruct((N, 1), jnp.float32),
        ),
        compiler_params=compiler_params,
    )(top_acts_b, w_dec_b, b_dec_f, x_f, x_mean)

    # ---- scalar losses (cheap glue over per-token reductions) ----
    total_variance = jnp.sum(pt_var)
    l2_loss = jnp.sum(pt_l2)
    fvu = l2_loss / total_variance
    l0_loss = jnp.mean(pt_l0)
    explained_variance = 1.0 - pt_l2[:, 0] / pt_var[:, 0]
    auxk_loss = jnp.float32(0.0)          # dead_mask is None path
    l2_loss_mean = l2_loss / (B * S * D)

    return (sae_out, top_acts_b, top_indices, fvu, l0_loss,
            l2_loss_mean, auxk_loss, explained_variance)


# ----------------------------------------------------------------------------
# Demo / smoke test
# ----------------------------------------------------------------------------
if __name__ == "__main__":
    # Small config consistent with SaeConfig: d_in, num_latents = d_in*expansion, k
    batch, sample, d_in = 2, 8, 32
    expansion_factor = 4
    num_latents = d_in * expansion_factor     # 128
    k = 4

    key = jax.random.PRNGKey(0)
    k_w, k_x = jax.random.split(key)

    # nn.Linear(d_in, num_latents) default init (uniform ±1/sqrt(d_in)); bias zeroed.
    bound = 1.0 / (d_in ** 0.5)
    w_enc = jax.random.uniform(k_w, (num_latents, d_in), jnp.float32, -bound, bound)
    b_enc = jnp.zeros((num_latents,), jnp.float32)
    # W_dec = encoder.weight clone, normalized to unit row norm (normalize_decoder=True)
    w_dec = w_enc / (jnp.linalg.norm(w_enc, axis=1, keepdims=True)
                     + jnp.finfo(jnp.float32).eps)
    b_dec = jnp.zeros((d_in,), jnp.float32)

    # Pre-transpose / pre-cast the parameters ONCE, outside the jitted forward
    # (no per-step HBM->HBM transpose; bf16 halves weight traffic).
    w_enc_t_b = jnp.asarray(w_enc.T, dtype=jnp.bfloat16)      # (d_in, L)
    w_dec_b = w_dec.astype(jnp.bfloat16)                      # (L, d_in)

    x = jax.random.normal(k_x, (batch, sample, d_in), jnp.float32)

    out = sae_forward(x, w_enc_t_b, b_enc, w_dec_b, b_dec, k=k)
    out = jax.block_until_ready(out)

    sae_out, latent_acts, latent_indices, fvu, l0, l2, auxk, ev = out
    N = batch * sample
    assert sae_out.shape == (N, d_in)
    assert latent_acts.shape == (N, num_latents)
    assert latent_indices.shape == (N, k)
    assert ev.shape == (N,)
    assert bool(jnp.isfinite(fvu)) and bool(jnp.isfinite(l2)) and bool(jnp.isfinite(l0))

    # Loose numerical sanity check of the decode kernel (bf16 streams, f32 acc)
    # against a pure-JAX f32 decode on the same selected activations.
    ref_out = latent_acts.astype(jnp.float32) @ w_dec + b_dec[None, :]
    assert bool(jnp.allclose(sae_out, ref_out, atol=5e-2, rtol=5e-2))

    # Sanity-check the fused per-token stats against a pure-JAX reference.
    x2d = x.reshape(N, d_in)
    ref_l2 = jnp.sum((ref_out - x2d) ** 2, axis=-1)
    ref_var = jnp.sum((x2d - jnp.mean(x2d, axis=0)) ** 2, axis=-1)
    assert bool(jnp.allclose(1.0 - ref_l2 / ref_var, ev, atol=5e-2, rtol=5e-2))

    print("KERNEL_OK")
</pallas_src>

<mosaic_0001>
module attributes {stable_mosaic.version = 11 : i64} {
  func.func @_encode_kernel(%arg0: i32, %arg1: i32, %arg2: i32, %arg3: memref<16x32xbf16, #tpu.memory_space<vmem>>, %arg4: memref<32x128xbf16, #tpu.memory_space<vmem>>, %arg5: memref<1x128xf32, #tpu.memory_space<vmem>>, %arg6: memref<16x128xbf16, #tpu.memory_space<vmem>>, %arg7: memref<16x1xf32, #tpu.memory_space<vmem>>, %arg8: memref<16x128xf32, #tpu.memory_space<vmem>>, %arg9: memref<16x1xf32, #tpu.memory_space<vmem>>) attributes {dimension_semantics = [#tpu.dimension_semantics<parallel>, #tpu.dimension_semantics<arbitrary>, #tpu.dimension_semantics<arbitrary>], iteration_bounds = array<i64: 1, 1, 1>, scalar_prefetch = 0 : i64, scratch_operands = 2 : i64, tpu.core_type = #tpu.core_type<tc>, window_params = [{transform_indices = @transform_0, window_bounds = array<i64: 16, 32>}, {transform_indices = @transform_1, window_bounds = array<i64: 32, 128>}, {transform_indices = @transform_2, window_bounds = array<i64: 1, 128>}, {transform_indices = @transform_3, window_bounds = array<i64: 16, 128>}, {transform_indices = @transform_4, window_bounds = array<i64: 16, 1>}]} {
    %c0_i32 = arith.constant 0 : i32
    %0 = arith.cmpi eq, %arg2, %c0_i32 : i32
    %1 = arith.extui %0 : i1 to i32
    %c0_i32_0 = arith.constant 0 : i32
    %2 = arith.cmpi ne, %1, %c0_i32_0 : i32
    scf.if %2 {
      %cst_10 = arith.constant 0.000000e+00 : f32
      %12 = vector.broadcast %cst_10 : f32 to vector<16x128xf32>
      %c0_11 = arith.constant 0 : index
      %c0_12 = arith.constant 0 : index
      %13 = vector.load %arg8[%c0_11, %c0_12] : memref<16x128xf32, #tpu.memory_space<vmem>>, vector<16x128xf32>
      tpu.vector_store %arg8[%c0_11, %c0_12], %12 {strides = array<i32>} : memref<16x128xf32, #tpu.memory_space<vmem>>, vector<16x128xf32>,
    } else {
    }
    %c0 = arith.constant 0 : index
    %c0_1 = arith.constant 0 : index
    %3 = vector.load %arg8[%c0, %c0_1] : memref<16x128xf32, #tpu.memory_space<vmem>>, vector<16x128xf32>
    %c0_2 = arith.constant 0 : index
    %c0_3 = arith.constant 0 : index
    %4 = vector.load %arg3[%c0_2, %c0_3] : memref<16x32xbf16, #tpu.memory_space<vmem>>, vector<16x32xbf16>
    %c0_4 = arith.constant 0 : index
    %c0_5 = arith.constant 0 : index
    %5 = vector.load %arg4[%c0_4, %c0_5] : memref<32x128xbf16, #tpu.memory_space<vmem>>, vector<32x128xbf16>
    %cst = arith.constant dense<0.000000e+00> : vector<16x128xf32>
    %6 = tpu.matmul %4, %5, %cst {dimension_numbers = #tpu.dot_dimension_numbers<[1], [0], [0], [1], [0, 0, 1, 1], [], []>} : vector<16x32xbf16>, vector<32x128xbf16>, vector<16x128xf32> -> vector<16x128xf32>
    %7 = arith.addf %3, %6 : vector<16x128xf32>
    %c0_6 = arith.constant 0 : index
    %c0_7 = arith.constant 0 : index
    %8 = vector.load %arg8[%c0_6, %c0_7] : memref<16x128xf32, #tpu.memory_space<vmem>>, vector<16x128xf32>
    tpu.vector_store %arg8[%c0_6, %c0_7], %7 {strides = array<i32>} : memref<16x128xf32, #tpu.memory_space<vmem>>, vector<16x128xf32>,
    %c0_i32_8 = arith.constant 0 : i32
    %9 = arith.cmpi eq, %arg2, %c0_i32_8 : i32
    %10 = arith.extui %9 : i1 to i32
    %c0_i32_9 = arith.constant 0 : i32
    %11 = arith.cmpi ne, %10, %c0_i32_9 : i32
    scf.if %11 {
      %c0_10 = arith.constant 0 : index
      %c0_11 = arith.constant 0 : index
      %12 = vector.load %arg8[%c0_10, %c0_11] : memref<16x128xf32, #tpu.memory_space<vmem>>, vector<16x128xf32>
      %c0_12 = arith.constant 0 : index
      %c0_13 = arith.constant 0 : index
      %13 = vector.load %arg5[%c0_12, %c0_13] : memref<1x128xf32, #tpu.memory_space<vmem>>, vector<1x128xf32>
      %14 = vector.broadcast %13 : vector<1x128xf32> to vector<16x128xf32>
      %15 = arith.addf %12, %14 : vector<16x128xf32>
      %cst_14 = arith.constant 0.000000e+00 : f32
      %16 = vector.broadcast %cst_14 : f32 to vector<16x128xf32>
      %17 = arith.maximumf %15, %16 : vector<16x128xf32>
      %18 = arith.truncf %17 : vector<16x128xf32> to vector<16x128xbf16>
      %c0_15 = arith.constant 0 : index
      %c0_16 = arith.constant 0 : index
      %19 = vector.load %arg6[%c0_15, %c0_16] : memref<16x128xbf16, #tpu.memory_space<vmem>>, vector<16x128xbf16>
      tpu.vector_store %arg6[%c0_15, %c0_16], %18 {strides = array<i32>} : memref<16x128xbf16, #tpu.memory_space<vmem>>, vector<16x128xbf16>,
      %cst_17 = arith.constant 0.000000e+00 : f32
      %20 = vector.broadcast %cst_17 : f32 to vector<16x128xf32>
      %21 = arith.cmpf ogt, %17, %20 : vector<16x128xf32>
      %22 = arith.extui %21 : vector<16x128xi1> to vector<16x128xi32>
      %23 = arith.sitofp %22 : vector<16x128xi32> to vector<16x128xf32>
      %cst_18 = arith.constant dense<0.000000e+00> : vector<16xf32>
      %24 = vector.multi_reduction <add>, %23, %cst_18 [1] : vector<16x128xf32> to vector<16xf32>
      %25 = vector.shape_cast %24 : vector<16xf32> to vector<16x1xf32>
      %c0_i32_19 = arith.constant 0 : i32
      %26 = arith.cmpi eq, %arg1, %c0_i32_19 : i32
      %27 = arith.extui %26 : i1 to i32
      %c0_i32_20 = arith.constant 0 : i32
      %28 = arith.cmpi ne, %27, %c0_i32_20 : i32
      scf.if %28 {
        %c0_25 = arith.constant 0 : index
        %c0_26 = arith.constant 0 : index
        %35 = vector.load %arg9[%c0_25, %c0_26] : memref<16x1xf32, #tpu.memory_space<vmem>>, vector<16x1xf32>
        tpu.vector_store %arg9[%c0_25, %c0_26], %25 {strides = array<i32>} : memref<16x1xf32, #tpu.memory_space<vmem>>, vector<16x1xf32>,
      } else {
      }
      %c0_i32_21 = arith.constant 0 : i32
      %29 = arith.cmpi sgt, %arg1, %c0_i32_21 : i32
      %30 = arith.extui %29 : i1 to i32
      %c0_i32_22 = arith.constant 0 : i32
      %31 = arith.cmpi ne, %30, %c0_i32_22 : i32
      scf.if %31 {
        %c0_25 = arith.constant 0 : index
        %c0_26 = arith.constant 0 : index
        %35 = vector.load %arg9[%c0_25, %c0_26] : memref<16x1xf32, #tpu.memory_space<vmem>>, vector<16x1xf32>
        %36 = arith.addf %35, %25 : vector<16x1xf32>
        %c0_27 = arith.constant 0 : index
        %c0_28 = arith.constant 0 : index
        %37 = vector.load %arg9[%c0_27, %c0_28] : memref<16x1xf32, #tpu.memory_space<vmem>>, vector<16x1xf32>
        tpu.vector_store %arg9[%c0_27, %c0_28], %36 {strides = array<i32>} : memref<16x1xf32, #tpu.memory_space<vmem>>, vector<16x1xf32>,
      } else {
      }
      %c0_i32_23 = arith.constant 0 : i32
      %32 = arith.cmpi eq, %arg1, %c0_i32_23 : i32
      %33 = arith.extui %32 : i1 to i32
      %c0_i32_24 = arith.constant 0 : i32
      %34 = arith.cmpi ne, %33, %c0_i32_24 : i32
      scf.if %34 {
        %c0_25 = arith.constant 0 : index
        %c0_26 = arith.constant 0 : index
        %35 = vector.load %arg9[%c0_25, %c0_26] : memref<16x1xf32, #tpu.memory_space<vmem>>, vector<16x1xf32>
        %c0_27 = arith.constant 0 : index
        %c0_28 = arith.constant 0 : index
        %36 = vector.load %arg7[%c0_27, %c0_28] : memref<16x1xf32, #tpu.memory_space<vmem>>, vector<16x1xf32>
        tpu.vector_store %arg7[%c0_27, %c0_28], %35 {strides = array<i32>} : memref<16x1xf32, #tpu.memory_space<vmem>>, vector<16x1xf32>,
      } else {
      }
    } else {
    }
    return
  }
  func.func @transform_0(%arg0: i32, %arg1: i32, %arg2: i32) -> (i32, i32) {
    %c0_i32 = arith.constant 0 : i32
    return %arg0, %arg2 : i32, i32
  }
  func.func @transform_1(%arg0: i32, %arg1: i32, %arg2: i32) -> (i32, i32) {
    %c0_i32 = arith.constant 0 : i32
    return %arg2, %arg1 : i32, i32
  }
  func.func @transform_2(%arg0: i32, %arg1: i32, %arg2: i32) -> (i32, i32) {
    %c0_i32 = arith.constant 0 : i32
    %c0_i32_0 = arith.constant 0 : i32
    return %c0_i32, %arg1 : i32, i32
  }
  func.func @transform_3(%arg0: i32, %arg1: i32, %arg2: i32) -> (i32, i32) {
    %c0_i32 = arith.constant 0 : i32
    return %arg0, %arg1 : i32, i32
  }
  func.func @transform_4(%arg0: i32, %arg1: i32, %arg2: i32) -> (i32, i32) {
    %c0_i32 = arith.constant 0 : i32
    %c0_i32_0 = arith.constant 0 : i32
    return %arg0, %c0_i32 : i32, i32
  }
}

module attributes {stable_mosaic.version = 11 : i64} {
  func.func @_decode_kernel(%arg0: i32, %arg1: i32, %arg2: i32, %arg3: memref<16x128xbf16, #tpu.memory_space<vmem>>, %arg4: memref<128x32xbf16, #tpu.memory_space<vmem>>, %arg5: memref<1x32xf32, #tpu.memory_space<vmem>>, %arg6: memref<16x32xf32, #tpu.memory_space<vmem>>, %arg7: memref<1x32xf32, #tpu.memory_space<vmem>>, %arg8: memref<16x32xf32, #tpu.memory_space<vmem>>, %arg9: memref<16x1xf32, #tpu.memory_space<vmem>>, %arg10: memref<16x1xf32, #tpu.memory_space<vmem>>, %arg11: memref<16x32xf32, #tpu.memory_space<vmem>>, %arg12: memref<16x1xf32, #tpu.memory_space<vmem>>, %arg13: memref<16x1xf32, #tpu.memory_space<vmem>>) attributes {dimension_semantics = [#tpu.dimension_semantics<parallel>, #tpu.dimension_semantics<arbitrary>, #tpu.dimension_semantics<arbitrary>], iteration_bounds = array<i64: 1, 1, 1>, scalar_prefetch = 0 : i64, scratch_operands = 3 : i64, tpu.core_type = #tpu.core_type<tc>, window_params = [{transform_indices = @transform_0, window_bounds = array<i64: 16, 128>}, {transform_indices = @transform_1, window_bounds = array<i64: 128, 32>}, {transform_indices = @transform_2, window_bounds = array<i64: 1, 32>}, {transform_indices = @transform_3, window_bounds = array<i64: 16, 32>}, {transform_indices = @transform_4, window_bounds = array<i64: 1, 32>}, {transform_indices = @transform_5, window_bounds = array<i64: 16, 32>}, {transform_indices = @transform_6, window_bounds = array<i64: 16, 1>}, {transform_indices = @transform_7, window_bounds = array<i64: 16, 1>}]} {
    %c0_i32 = arith.constant 0 : i32
    %0 = arith.cmpi eq, %arg2, %c0_i32 : i32
    %1 = arith.extui %0 : i1 to i32
    %c0_i32_0 = arith.constant 0 : i32
    %2 = arith.cmpi ne, %1, %c0_i32_0 : i32
    scf.if %2 {
      %cst_10 = arith.constant 0.000000e+00 : f32
      %12 = vector.broadcast %cst_10 : f32 to vector<16x32xf32>
      %c0_11 = arith.constant 0 : index
      %c0_12 = arith.constant 0 : index
      %13 = vector.load %arg11[%c0_11, %c0_12] : memref<16x32xf32, #tpu.memory_space<vmem>>, vector<16x32xf32>
      tpu.vector_store %arg11[%c0_11, %c0_12], %12 {strides = array<i32>} : memref<16x32xf32, #tpu.memory_space<vmem>>, vector<16x32xf32>,
    } else {
    }
    %c0 = arith.constant 0 : index
    %c0_1 = arith.constant 0 : index
    %3 = vector.load %arg11[%c0, %c0_1] : memref<16x32xf32, #tpu.memory_space<vmem>>, vector<16x32xf32>
    %c0_2 = arith.constant 0 : index
    %c0_3 = arith.constant 0 : index
    %4 = vector.load %arg3[%c0_2, %c0_3] : memref<16x128xbf16, #tpu.memory_space<vmem>>, vector<16x128xbf16>
    %c0_4 = arith.constant 0 : index
    %c0_5 = arith.constant 0 : index
    %5 = vector.load %arg4[%c0_4, %c0_5] : memref<128x32xbf16, #tpu.memory_space<vmem>>, vector<128x32xbf16>
    %cst = arith.constant dense<0.000000e+00> : vector<16x32xf32>
    %6 = tpu.matmul %4, %5, %cst {dimension_numbers = #tpu.dot_dimension_numbers<[1], [0], [0], [1], [0, 0, 1, 1], [], []>} : vector<16x128xbf16>, vector<128x32xbf16>, vector<16x32xf32> -> vector<16x32xf32>
    %7 = arith.addf %3, %6 : vector<16x32xf32>
    %c0_6 = arith.constant 0 : index
    %c0_7 = arith.constant 0 : index
    %8 = vector.load %arg11[%c0_6, %c0_7] : memref<16x32xf32, #tpu.memory_space<vmem>>, vector<16x32xf32>
    tpu.vector_store %arg11[%c0_6, %c0_7], %7 {strides = array<i32>} : memref<16x32xf32, #tpu.memory_space<vmem>>, vector<16x32xf32>,
    %c0_i32_8 = arith.constant 0 : i32
    %9 = arith.cmpi eq, %arg2, %c0_i32_8 : i32
    %10 = arith.extui %9 : i1 to i32
    %c0_i32_9 = arith.constant 0 : i32
    %11 = arith.cmpi ne, %10, %c0_i32_9 : i32
    scf.if %11 {
      %c0_10 = arith.constant 0 : index
      %c0_11 = arith.constant 0 : index
      %12 = vector.load %arg11[%c0_10, %c0_11] : memref<16x32xf32, #tpu.memory_space<vmem>>, vector<16x32xf32>
      %c0_12 = arith.constant 0 : index
      %c0_13 = arith.constant 0 : index
      %13 = vector.load %arg5[%c0_12, %c0_13] : memref<1x32xf32, #tpu.memory_space<vmem>>, vector<1x32xf32>
      %14 = vector.broadcast %13 : vector<1x32xf32> to vector<16x32xf32>
      %15 = arith.addf %12, %14 : vector<16x32xf32>
      %c0_14 = arith.constant 0 : index
      %c0_15 = arith.constant 0 : index
      %16 = vector.load %arg8[%c0_14, %c0_15] : memref<16x32xf32, #tpu.memory_space<vmem>>, vector<16x32xf32>
      tpu.vector_store %arg8[%c0_14, %c0_15], %15 {strides = array<i32>} : memref<16x32xf32, #tpu.memory_space<vmem>>, vector<16x32xf32>,
      %c0_16 = arith.constant 0 : index
      %c0_17 = arith.constant 0 : index
      %17 = vector.load %arg6[%c0_16, %c0_17] : memref<16x32xf32, #tpu.memory_space<vmem>>, vector<16x32xf32>
      %18 = arith.subf %15, %17 : vector<16x32xf32>
      %19 = arith.mulf %18, %18 : vector<16x32xf32>
      %cst_18 = arith.constant dense<0.000000e+00> : vector<16xf32>
      %20 = vector.multi_reduction <add>, %19, %cst_18 [1] : vector<16x32xf32> to vector<16xf32>
      %21 = vector.shape_cast %20 : vector<16xf32> to vector<16x1xf32>
      %c0_19 = arith.constant 0 : index
      %c0_20 = arith.constant 0 : index
      %22 = vector.load %arg7[%c0_19, %c0_20] : memref<1x32xf32, #tpu.memory_space<vmem>>, vector<1x32xf32>
      %23 = vector.broadcast %22 : vector<1x32xf32> to vector<16x32xf32>
      %24 = arith.subf %17, %23 : vector<16x32xf32>
      %25 = arith.mulf %24, %24 : vector<16x32xf32>
      %cst_21 = arith.constant dense<0.000000e+00> : vector<16xf32>
      %26 = vector.multi_reduction <add>, %25, %cst_21 [1] : vector<16x32xf32> to vector<16xf32>
      %27 = vector.shape_cast %26 : vector<16xf32> to vector<16x1xf32>
      %c0_i32_22 = arith.constant 0 : i32
      %28 = arith.cmpi eq, %arg1, %c0_i32_22 : i32
      %29 = arith.extui %28 : i1 to i32
      %c0_i32_23 = arith.constant 0 : i32
      %30 = arith.cmpi ne, %29, %c0_i32_23 : i32
      scf.if %30 {
        %c0_28 = arith.constant 0 : index
        %c0_29 = arith.constant 0 : index
        %37 = vector.load %arg12[%c0_28, %c0_29] : memref<16x1xf32, #tpu.memory_space<vmem>>, vector<16x1xf32>
        tpu.vector_store %arg12[%c0_28, %c0_29], %21 {strides = array<i32>} : memref<16x1xf32, #tpu.memory_space<vmem>>, vector<16x1xf32>,
        %c0_30 = arith.constant 0 : index
        %c0_31 = arith.constant 0 : index
        %38 = vector.load %arg13[%c0_30, %c0_31] : memref<16x1xf32, #tpu.memory_space<vmem>>, vector<16x1xf32>
        tpu.vector_store %arg13[%c0_30, %c0_31], %27 {strides = array<i32>} : memref<16x1xf32, #tpu.memory_space<vmem>>, vector<16x1xf32>,
      } else {
      }
      %c0_i32_24 = arith.constant 0 : i32
      %31 = arith.cmpi sgt, %arg1, %c0_i32_24 : i32
      %32 = arith.extui %31 : i1 to i32
      %c0_i32_25 = arith.constant 0 : i32
      %33 = arith.cmpi ne, %32, %c0_i32_25 : i32
      scf.if %33 {
        %c0_28 = arith.constant 0 : index
        %c0_29 = arith.constant 0 : index
        %37 = vector.load %arg12[%c0_28, %c0_29] : memref<16x1xf32, #tpu.memory_space<vmem>>, vector<16x1xf32>
        %38 = arith.addf %37, %21 : vector<16x1xf32>
        %c0_30 = arith.constant 0 : index
        %c0_31 = arith.constant 0 : index
        %39 = vector.load %arg12[%c0_30, %c0_31] : memref<16x1xf32, #tpu.memory_space<vmem>>, vector<16x1xf32>
        tpu.vector_store %arg12[%c0_30, %c0_31], %38 {strides = array<i32>} : memref<16x1xf32, #tpu.memory_space<vmem>>, vector<16x1xf32>,
        %c0_32 = arith.constant 0 : index
        %c0_33 = arith.constant 0 : index
        %40 = vector.load %arg13[%c0_32, %c0_33] : memref<16x1xf32, #tpu.memory_space<vmem>>, vector<16x1xf32>
        %41 = arith.addf %40, %27 : vector<16x1xf32>
        %c0_34 = arith.constant 0 : index
        %c0_35 = arith.constant 0 : index
        %42 = vector.load %arg13[%c0_34, %c0_35] : memref<16x1xf32, #tpu.memory_space<vmem>>, vector<16x1xf32>
        tpu.vector_store %arg13[%c0_34, %c0_35], %41 {strides = array<i32>} : memref<16x1xf32, #tpu.memory_space<vmem>>, vector<16x1xf32>,
      } else {
      }
      %c0_i32_26 = arith.constant 0 : i32
      %34 = arith.cmpi eq, %arg1, %c0_i32_26 : i32
      %35 = arith.extui %34 : i1 to i32
      %c0_i32_27 = arith.constant 0 : i32
      %36 = arith.cmpi ne, %35, %c0_i32_27 : i32
      scf.if %36 {
        %c0_28 = arith.constant 0 : index
        %c0_29 = arith.constant 0 : index
        %37 = vector.load %arg12[%c0_28, %c0_29] : memref<16x1xf32, #tpu.memory_space<vmem>>, vector<16x1xf32>
        %c0_30 = arith.constant 0 : index
        %c0_31 = arith.constant 0 : index
        %38 = vector.load %arg9[%c0_30, %c0_31] : memref<16x1xf32, #tpu.memory_space<vmem>>, vector<16x1xf32>
        tpu.vector_store %arg9[%c0_30, %c0_31], %37 {strides = array<i32>} : memref<16x1xf32, #tpu.memory_space<vmem>>, vector<16x1xf32>,
        %c0_32 = arith.constant 0 : index
        %c0_33 = arith.constant 0 : index
        %39 = vector.load %arg13[%c0_32, %c0_33] : memref<16x1xf32, #tpu.memory_space<vmem>>, vector<16x1xf32>
        %c0_34 = arith.constant 0 : index
        %c0_35 = arith.constant 0 : index
        %40 = vector.load %arg10[%c0_34, %c0_35] : memref<16x1xf32, #tpu.memory_space<vmem>>, vector<16x1xf32>
        tpu.vector_store %arg10[%c0_34, %c0_35], %39 {strides = array<i32>} : memref<16x1xf32, #tpu.memory_space<vmem>>, vector<16x1xf32>,
      } else {
      }
    } else {
    }
    return
  }
  func.func @transform_0(%arg0: i32, %arg1: i32, %arg2: i32) -> (i32, i32) {
    %c0_i32 = arith.constant 0 : i32
    return %arg0, %arg2 : i32, i32
  }
  func.func @transform_1(%arg0: i32, %arg1: i32, %arg2: i32) -> (i32, i32) {
    %c0_i32 = arith.constant 0 : i32
    return %arg2, %arg1 : i32, i32
  }
  func.func @transform_2(%arg0: i32, %arg1: i32, %arg2: i32) -> (i32, i32) {
    %c0_i32 = arith.constant 0 : i32
    %c0_i32_0 = arith.constant 0 : i32
    return %c0_i32, %arg1 : i32, i32
  }
  func.func @transform_3(%arg0: i32, %arg1: i32, %arg2: i32) -> (i32, i32) {
    %c0_i32 = arith.constant 0 : i32
    return %arg0, %arg1 : i32, i32
  }
  func.func @transform_4(%arg0: i32, %arg1: i32, %arg2: i32) -> (i32, i32) {
    %c0_i32 = arith.constant 0 : i32
    %c0_i32_0 = arith.constant 0 : i32
    return %c0_i32, %arg1 : i32, i32
  }
  func.func @transform_5(%arg0: i32, %arg1: i32, %arg2: i32) -> (i32, i32) {
    %c0_i32 = arith.constant 0 : i32
    return %arg0, %arg1 : i32, i32
  }
  func.func @transform_6(%arg0: i32, %arg1: i32, %arg2: i32) -> (i32, i32) {
    %c0_i32 = arith.constant 0 : i32
    %c0_i32_0 = arith.constant 0 : i32
    return %arg0, %c0_i32 : i32, i32
  }
  func.func @transform_7(%arg0: i32, %arg1: i32, %arg2: i32) -> (i32, i32) {
    %c0_i32 = arith.constant 0 : i32
    %c0_i32_0 = arith.constant 0 : i32
    return %arg0, %c0_i32 : i32, i32
  }
}

</mosaic_0001>

<bundles_post_ra>
// kernel: sae_forward.2
= control target key start
LH: loop header
LB: loop body
LE: loop exit
PB: predicated region body
PF: predicated region fallthrough
CT: control target
= control target key end

     0   :  { %vm48_vm0 = vcmask 261120   ;;  %v156_v7 = vmov 0.0   ;;  %vm101_vm3 = vcmask 7168   ;;  %s203_s1 = inlined_call_operand.vmem [shape: bf16[32,128], index: 1, kind: input, shape index: {}]   ;;  %s204_s2 = inlined_call_operand.vmem [shape: f32[1,128], index: 2, kind: input, shape index: {}]   ;;  %s205_s0 = inlined_call_operand.vmem [shape: bf16[16,32], index: 0, kind: input, shape index: {}]   ;;  %s206_s3 = inlined_call_operand.vmem [shape: bf16[16,128], index: 3, kind: output, shape index: {0}]   ;;  %s207_s4 = inlined_call_operand.vmem [shape: f32[16,1], index: 4, kind: output, shape index: {1}]  }
   0x1   :  { %v148_v0 = vld [vmem:[%s203_s1 + $0x8] sm:$0xff]  ;;  %v147_v1 = vld [vmem:[%s203_s1] sm:$0xff] }
   0x2   :  { %58 = vmatpush.bf16.msra.mxu0 %v148_v0  ;;  %v146_v2 = vld [vmem:[%s205_s0] sm:$0xff] }
   0x3   :  { %v155_v3 = vld [vmem:[%s204_s2] ss:$0 sm:$0xff] }
   0x6   :  { %59 = vmatpush.bf16.msra.mxu0 %v147_v1 }
   0x9   :  { %143 = vmatmul.msk.bf16.vlgmr.msra.gmra.mxu0 %vm48_vm0, %v146_v2 }
  0x86   :  { %v61_v4 = vpop.f32.mrf.mxu0 }
  0x87   :  { %v79_v5 = vadd.f32 %v155_v3, %v61_v4 }
  0x89   :  { %v81_v6 = vmax.f32 %v79_v5, 0.0 }
  0x8b   :  { %vm87_vm1 = vcmp.gt.f32.partialorder %v81_v6, 0.0 }
  0x8c   :  { %v144_v8 = vsel %vm87_vm1, 1.0, %v156_v7 }
  0x8d   :  { %93 = vadd.xlane.f32.xlu0 %v144_v8 }
  0x8e   :  { %v63_v9 = vpop.f32.mrf.mxu0 }
  0x8f   :  { %v80_v10 = vadd.f32 %v155_v3, %v63_v9 }
  0x91   :  { %v82_v11 = vmax.f32 %v80_v10, 0.0 }
  0x93   :  { %v152_v12 = vpack.c.bf16 %v82_v11, %v81_v6  ;;  %vm88_vm2 = vcmp.gt.f32.partialorder %v82_v11, 0.0 }
  0x94   :  { %v145_v13 = vsel %vm88_vm2, 1.0, %v156_v7 }
  0x95   :  { %153 = vst [vmem:[%s206_s3] sm:$0xff] %v152_v12   ;;  %95 = vadd.xlane.f32.xlu0 %v145_v13 }
 0x100   :  { %v94_v14 = vpop.xlane.xlu0 %93 }
 0x101   :  { %102 = vst.msk [vmem:[#allocation3] sm:$0xff] %vm101_vm3, %v94_v14 }
 0x108   :  { %v118_v15 = vld [vmem:[#allocation3] sm:$0xff]  ;;  %v96_v16 = vpop.xlane.xlu0 %95 }
 0x109   :  { %121 = vst.msk [vmem:[%s207_s4] sm:$0xff] %vm101_vm3, %v118_v15 }
 0x10a   :  { %103 = vst.msk [vmem:[#allocation3 + $0x8] sm:$0xff] %vm101_vm3, %v96_v16 }
 0x111   :  { %v119_v17 = vld [vmem:[#allocation3 + $0x8] sm:$0xff] }
 0x112   :  { %122 = vst.msk [vmem:[%s207_s4 + $0x8] sm:$0xff] %vm101_vm3, %v119_v17 }

// kernel: sae_forward.3
= control target key start
LH: loop header
LB: loop body
LE: loop exit
PB: predicated region body
PF: predicated region fallthrough
CT: control target
= control target key end

     0   :  { %vm28_vm0 = vcmask 261120   ;;  %v304_v2 = vmov 0.0   ;;  %s420_s0 = inlined_call_operand.vmem [shape: bf16[16,128], index: 0, kind: input, shape index: {}]   ;;  %s421_s1 = inlined_call_operand.vmem [shape: bf16[128,32], index: 1, kind: input, shape index: {}]   ;;  %s422_s2 = inlined_call_operand.vmem [shape: f32[1,32], index: 2, kind: input, shape index: {}]   ;;  %s423_s3 = inlined_call_operand.vmem [shape: f32[16,32], index: 3, kind: input, shape index: {}]   ;;  %s424_s4 = inlined_call_operand.vmem [shape: f32[1,32], index: 4, kind: input, shape index: {}]   ;;  %s425_s5 = inlined_call_operand.hbm [shape: f32[16,32], index: 5, kind: output, shape index: {0}]   ;;  %s426_s6 = inlined_call_operand.vmem [shape: f32[16,1], index: 6, kind: output, shape index: {1}]   ;;  %s427_s7 = inlined_call_operand.vmem [shape: f32[16,1], index: 7, kind: output, shape index: {2}]  }
   0x1   :  { %v271_v0 = vld [vmem:[%s421_s1 + $0x38] sm:$0xff]  ;;  %v270_v1 = vld [vmem:[%s421_s1 + $0x30] sm:$0xff]  ;;  %29 = vst.msk [vmem:[#allocation2] sm:$0xff] %vm28_vm0, %v304_v2 }
   0x2   :  { %105 = vmatpush.bf16.msra.mxu0 %v271_v0  ;;  %30 = vst.msk [vmem:[#allocation2 + $0x8] sm:$0xff] %vm28_vm0, %v304_v2 }
   0x3   :  { %13 = vsyncpa [#allocation6], 0  ;;  %v269_v3 = vld [vmem:[%s421_s1 + $0x28] sm:$0xff]  ;;  %v268_v4 = vld [vmem:[%s421_s1 + $0x20] sm:$0xff]  ;;  %s207_s26 = sshll.u32 %s425_s5, 4  ;;  %s306_s27 = smov 128   ;;  %s208_s26 = int_to_ptr.hbm [resolvable:$true] %s207_s26 }
   0x4   :  { %v267_v5 = vld [vmem:[%s421_s1 + $0x18] sm:$0xff]  ;;  %v266_v6 = vld [vmem:[%s421_s1 + $0x10] sm:$0xff]  ;;  %v265_v7 = vld [vmem:[%s421_s1 + $0x8] sm:$0xff]  ;;  %s307_s28 = smov 8   ;;  %vm167_vm1 = vcmask 7168  }
   0x5   :  { %v264_v8 = vld [vmem:[%s421_s1] sm:$0xff]  ;;  %v138_v15 = vld [vmem:[%s423_s3 + $0x8] sm:$0xff] }
   0x6   :  { %106 = vmatpush.bf16.msra.mxu0 %v270_v1  ;;  %v263_v9 = vld [vmem:[%s420_s0] sm:$0xff] }
   0x7   :  { %v137_v10 = vld [vmem:[%s423_s3] sm:$0xff]  ;;  %s305_s3 = smov [#allocation5]  }
   0x8   :  { %v276_v11 = vld [vmem:[%s424_s4] ss:$0 sm:$0xff] }
   0x9   :  { %v153_v12 = vsub.f32 %v137_v10, %v276_v11  ;;  %v154_v16 = vsub.f32 %v138_v15, %v276_v11  ;;  %v31_v19 = vld [vmem:[#allocation2] sm:$0xff]  ;;  %v32_v22 = vld [vmem:[#allocation2 + $0x8] sm:$0xff] }
   0xa   :  { %107 = vmatpush.bf16.msra.mxu0 %v269_v3  ;;  %v277_v23 = vld [vmem:[%s422_s2] ss:$0 sm:$0xff]  ;;  %s205_s2 = sshll.u32 %s305_s3, 4  ;;  %s206_s2 = int_to_ptr.vmem [resolvable:$true] %s205_s2 }
   0xb   :  { %v155_v13 = vmul.f32 %v153_v12, %v153_v12  ;;  %v156_v17 = vmul.f32 %v154_v16, %v154_v16 }
   0xd   :  { %v157_v14 = vsel %vm28_vm0, %v155_v13, 0.0  ;;  %v160_v18 = vsel %vm28_vm0, %v156_v17, 0.0 }
   0xe   :  { %108 = vmatpush.bf16.msra.mxu0 %v268_v4  ;;  %158 = vadd.xlane.f32.xlu1 %v157_v14 }
  0x12   :  { %109 = vmatpush.bf16.msra.mxu0 %v267_v5 }
  0x16   :  { %110 = vmatpush.bf16.msra.mxu0 %v266_v6  ;;  %161 = vadd.xlane.f32.xlu1 %v160_v18 }
  0x1a   :  { %111 = vmatpush.bf16.msra.mxu0 %v265_v7 }
  0x1e   :  { %112 = vmatpush.bf16.msra.mxu0 %v264_v8 }
  0x21   :  { %113 = vmatmul.bf16.vlgmr.msra.gmra.mxu0 %v263_v9 }
  0x81   :  { %v159_v36 = vpop.xlane.xlu1 %158 }
  0x82   :  { %170 = vst.msk [vmem:[#allocation4] sm:$0xff] %vm167_vm1, %v159_v36 }
  0x89   :  { %v197_v37 = vld [vmem:[#allocation4] sm:$0xff]  ;;  %v162_v38 = vpop.xlane.xlu1 %161 }
  0x8a   :  { %199 = vst.msk [vmem:[%s427_s7] sm:$0xff] %vm167_vm1, %v197_v37 }
  0x8b   :  { %171 = vst.msk [vmem:[#allocation4 + $0x8] sm:$0xff] %vm167_vm1, %v162_v38 }
  0x92   :  { %v198_v39 = vld [vmem:[#allocation4 + $0x8] sm:$0xff] }
  0x93   :  { %200 = vst.msk [vmem:[%s427_s7 + $0x8] sm:$0xff] %vm167_vm1, %v198_v39 }
  0x9e   :  { %v114_v20 = vpop.f32.mrf.mxu0 }
  0x9f   :  { %v119_v21 = vadd.f32 %v114_v20, %v31_v19 }
  0xa1   :  { %122 = vst.msk [vmem:[#allocation2] sm:$0xff] %vm28_vm0, %v119_v21 }
  0xa6   :  { %v116_v24 = vpop.f32.mrf.mxu0 }
  0xa7   :  { %v120_v25 = vadd.f32 %v116_v24, %v32_v22 }
  0xa8   :  { %v127_v26 = vld [vmem:[#allocation2] sm:$0xff] }
  0xa9   :  { %123 = vst.msk [vmem:[#allocation2 + $0x8] sm:$0xff] %vm28_vm0, %v120_v25  ;;  %v133_v27 = vadd.f32 %v277_v23, %v127_v26 }
  0xab   :  { %v139_v28 = vsub.f32 %v133_v27, %v137_v10  ;;  %135 = vst.msk [vmem:[#allocation5] sm:$0xff] %vm28_vm0, %v133_v27 }
  0xad   :  { %v141_v29 = vmul.f32 %v139_v28, %v139_v28 }
  0xaf   :  { %v143_v30 = vsel %vm28_vm0, %v141_v29, 0.0 }
  0xb0   :  { %144 = vadd.xlane.f32.xlu0 %v143_v30  ;;  %v128_v31 = vld [vmem:[#allocation2 + $0x8] sm:$0xff] }
  0xb1   :  { %v134_v32 = vadd.f32 %v277_v23, %v128_v31 }
  0xb3   :  { %136 = vst.msk [vmem:[#allocation5 + $0x8] sm:$0xff] %vm28_vm0, %v134_v32  ;;  %v140_v33 = vsub.f32 %v134_v32, %v138_v15 }
  0xb4   :  { %213 = dma.vmem_to_hbm [thread:$0]  %s206_s2, 256, %s208_s26, [#allocation6], %s306_s27, %s306_s27, %s307_s28  }
  0xb5   :  { %v142_v34 = vmul.f32 %v140_v33, %v140_v33 }
  0xb7   :  { %v146_v35 = vsel %vm28_vm0, %v142_v34, 0.0 }
  0xb8   :  { %147 = vadd.xlane.f32.xlu0 %v146_v35 }
 0x123   :  { %v145_v40 = vpop.xlane.xlu0 %144 }
 0x124   :  { %168 = vst.msk [vmem:[#allocation3] sm:$0xff] %vm167_vm1, %v145_v40 }
 0x12b   :  { %v192_v41 = vld [vmem:[#allocation3] sm:$0xff]  ;;  %v148_v42 = vpop.xlane.xlu0 %147 }
 0x12c   :  { %195 = vst.msk [vmem:[%s426_s6] sm:$0xff] %vm167_vm1, %v192_v41 }
 0x12d   :  { %169 = vst.msk [vmem:[#allocation3 + $0x8] sm:$0xff] %vm167_vm1, %v148_v42 }
 0x134   :  { %v193_v43 = vld [vmem:[#allocation3 + $0x8] sm:$0xff] }
 0x135   :  { %196 = vst.msk [vmem:[%s426_s6 + $0x8] sm:$0xff] %vm167_vm1, %v193_v43 }
 0x136   :  { %302 = dma.done.wait [#allocation6], 256  }
 0x137   :  { %303 = vsyncadd [#allocation6], 4294967040 }
 0x138   :  { %226 = vsyncpa [#allocation6], 1 }

</bundles_post_ra>
